<compile_context>
chip_gen: v5e
topology: v5e:2x2
jax: 0.10.0
libtpu: 0.0.40
codegen_flags: <defaults>
</compile_context>

<pallas_src>
import jax
import jax.numpy as jnp
from jax.experimental import pallas as pl
from jax.experimental.pallas import tpu as pltpu


def _round_up(x, m):
    return ((x + m - 1) // m) * m


def _map_kernel(inst_ref, x_ref, w1_ref, w2_ref, w3_ref, b3_ref,
                cent_ref, logit_ref, emb_ref, acc_ref):
    """Streaming masked average pooling + MLP head.

    Grid axis 0 tiles the point dimension. Each step accumulates the fused
    segmented sums  mask @ [features | coords | ones]  into acc_ref [K, D+4];
    the reciprocal / MLP / output stores happen only on the last step.
    """
    step = pl.program_id(0)

    @pl.when(step == 0)
    def _():
        acc_ref[...] = jnp.zeros_like(acc_ref)

    K = acc_ref.shape[0]
    tile_n = x_ref.shape[0]

    # One-hot instance mask [K, tile_n]. Background / padded rows (label -1)
    # never match any row k >= 0 and are therefore excluded.
    ids = jax.lax.broadcasted_iota(jnp.int32, (K, tile_n), 0)
    mask = (inst_ref[...] == ids).astype(jnp.float32)

    # Single fused MXU matmul per tile: feature sums, coord sums and counts.
    acc_ref[...] += jnp.dot(mask, x_ref[...],
                            preferred_element_type=jnp.float32)

    @pl.when(step == pl.num_programs(0) - 1)
    def _():
        D = emb_ref.shape[1]
        sums = acc_ref[...]                                  # [K, D+4]
        counts = jnp.maximum(sums[:, D + 3:D + 4], 1.0)      # [K, 1]
        inv = pl.reciprocal(counts, approx=False)            # EUP slot, exact
        emb = sums[:, :D] * inv                               # [K, D]
        cent_ref[...] = sums[:, D:D + 3] * inv                # [K, 3]
        emb_ref[...] = emb

        # MLP head (tiny; runs once).
        h = jnp.maximum(jnp.dot(emb, w1_ref[...],
                                preferred_element_type=jnp.float32), 0.0)
        h = jnp.maximum(jnp.dot(h, w2_ref[...],
                                preferred_element_type=jnp.float32), 0.0)
        logit_ref[...] = jnp.dot(h, w3_ref[...],
                                 preferred_element_type=jnp.float32) + b3_ref[...]


def masked_average_pooling(instances, features, coords, w1, w2, w3, b3,
                           num_instances, *, tile_n=2048):
    """instances: [1, N] int32; features: [N, D] f32; coords: [N, 3] f32."""
    N, D = features.shape
    K = num_instances
    H = w1.shape[1]
    out_channels = w3.shape[1]
    c = D + 4  # features | coords(3) | ones(1)

    # Fused lane-dense slab X = [features | coords | ones].
    x = jnp.concatenate(
        [features.astype(jnp.float32),
         coords.astype(jnp.float32),
         jnp.ones((N, 1), jnp.float32)], axis=1)

    # Tile the point axis; the tile must be a multiple of 128 (lane dim of the
    # label block). Pad N up to a multiple of the tile with label -1.
    tile_n = _round_up(min(tile_n, _round_up(N, 128)), 128)
    n_pad = _round_up(N, tile_n)
    inst = instances.astype(jnp.int32)
    if n_pad != N:
        x = jnp.pad(x, ((0, n_pad - N), (0, 0)))
        inst = jnp.pad(inst, ((0, 0), (0, n_pad - N)), constant_values=-1)
    grid = (n_pad // tile_n,)

    cost = pl.CostEstimate(
        flops=2 * K * n_pad * c + 2 * K * (D * H + H * H + H * out_channels),
        transcendentals=0,
        bytes_accessed=4 * (n_pad * c + n_pad
                            + K * (D + 3 + out_channels)
                            + D * H + H * H + H * out_channels + out_channels))

    return pl.pallas_call(
        _map_kernel,
        out_shape=(
            jax.ShapeDtypeStruct((K, 3), jnp.float32),             # centroids
            jax.ShapeDtypeStruct((K, out_channels), jnp.float32),  # mlp(emb)
            jax.ShapeDtypeStruct((K, D), jnp.float32),             # embeddings
        ),
        grid_spec=pltpu.PrefetchScalarGridSpec(
            num_scalar_prefetch=0,
            grid=grid,
            in_specs=[
                pl.BlockSpec((1, tile_n), lambda i: (0, i)),        # labels
                pl.BlockSpec((tile_n, c), lambda i: (i, 0)),        # [F|C|1]
                pl.BlockSpec((D, H), lambda i: (0, 0)),             # W1 resident
                pl.BlockSpec((H, H), lambda i: (0, 0)),             # W2 resident
                pl.BlockSpec((H, out_channels), lambda i: (0, 0)),  # W3 resident
                pl.BlockSpec((1, out_channels), lambda i: (0, 0)),  # b3 resident
            ],
            out_specs=(
                pl.BlockSpec((K, 3), lambda i: (0, 0)),
                pl.BlockSpec((K, out_channels), lambda i: (0, 0)),
                pl.BlockSpec((K, D), lambda i: (0, 0)),
            ),
            scratch_shapes=[pltpu.VMEM((K, c), jnp.float32)],       # sums acc
        ),
        compiler_params=pltpu.CompilerParams(
            dimension_semantics=("arbitrary",),      # N axis is a reduction
            vmem_limit_bytes=32 * 1024 * 1024),      # safe on v5e/v6e/v7x
        cost_estimate=cost,
    )(inst, x, w1, w2, w3, b3)


if __name__ == "__main__":
    # Small, deterministic synthetic problem (N not a multiple of the tile so
    # the padding + multi-step accumulation paths are exercised).
    N = 600            # number of points
    D = 32             # num_features
    K = 8              # number of instances (labels 0..K-1, plus -1 background)
    OUT = 16           # out_channels
    HID = 64           # MLP hidden width (fixed by module definition)

    key = jax.random.PRNGKey(0)
    k_feat, k_coord, k_inst, k_w1, k_w2, k_w3, k_b3 = jax.random.split(key, 7)

    features = jax.random.normal(k_feat, (N, D), dtype=jnp.float32)
    coords = jax.random.normal(k_coord, (N, 3), dtype=jnp.float32)
    # Instance labels in {-1, 0, ..., K-1}; guarantee every id appears.
    inst = jax.random.randint(k_inst, (N,), -1, K, dtype=jnp.int32)
    inst = inst.at[: K + 1].set(jnp.arange(-1, K, dtype=jnp.int32))
    instances = inst.reshape(1, N)

    # MLP parameters (nn.Linear weights transposed so the kernel does x @ W).
    w1 = jax.random.normal(k_w1, (D, HID), dtype=jnp.float32) * 0.1
    w2 = jax.random.normal(k_w2, (HID, HID), dtype=jnp.float32) * 0.1
    w3 = jax.random.normal(k_w3, (HID, OUT), dtype=jnp.float32) * 0.1
    b3 = jax.random.normal(k_b3, (1, OUT), dtype=jnp.float32) * 0.1

    centroids, logits, embeddings = jax.block_until_ready(
        masked_average_pooling(instances, features, coords, w1, w2, w3, b3, K,
                               tile_n=256)
    )

    # Plain-JAX reference (segmented means + MLP).
    onehot = (inst[None, :] == jnp.arange(K, dtype=jnp.int32)[:, None]).astype(
        jnp.float32)
    cnt = jnp.maximum(onehot.sum(1, keepdims=True), 1.0)
    emb_ref = onehot @ features / cnt
    cent_ref = onehot @ coords / cnt
    h = jnp.maximum(emb_ref @ w1, 0.0)
    h = jnp.maximum(h @ w2, 0.0)
    logit_ref = h @ w3 + b3

    assert jnp.allclose(embeddings, emb_ref, atol=1e-4, rtol=1e-4)
    assert jnp.allclose(centroids, cent_ref, atol=1e-4, rtol=1e-4)
    assert jnp.allclose(logits, logit_ref, atol=1e-4, rtol=1e-4)

    print("KERNEL_OK")
</pallas_src>

<mosaic_0001>
module attributes {stable_mosaic.version = 11 : i64} {
  func.func @_map_kernel(%arg0: i32, %arg1: memref<1x256xi32, #tpu.memory_space<vmem>>, %arg2: memref<256x36xf32, #tpu.memory_space<vmem>>, %arg3: memref<32x64xf32, #tpu.memory_space<vmem>>, %arg4: memref<64x64xf32, #tpu.memory_space<vmem>>, %arg5: memref<64x16xf32, #tpu.memory_space<vmem>>, %arg6: memref<1x16xf32, #tpu.memory_space<vmem>>, %arg7: memref<8x3xf32, #tpu.memory_space<vmem>>, %arg8: memref<8x16xf32, #tpu.memory_space<vmem>>, %arg9: memref<8x32xf32, #tpu.memory_space<vmem>>, %arg10: memref<8x36xf32, #tpu.memory_space<vmem>>) attributes {dimension_semantics = [#tpu.dimension_semantics<arbitrary>], iteration_bounds = array<i64: 3>, scalar_prefetch = 0 : i64, scratch_operands = 1 : i64, tpu.core_type = #tpu.core_type<tc>, window_params = [{transform_indices = @transform_0, window_bounds = array<i64: 1, 256>}, {transform_indices = @transform_1, window_bounds = array<i64: 256, 36>}, {pipeline_mode = #tpu.pipeline_mode<synchronous>, transform_indices = @transform_2, window_bounds = array<i64: 32, 64>}, {pipeline_mode = #tpu.pipeline_mode<synchronous>, transform_indices = @transform_3, window_bounds = array<i64: 64, 64>}, {pipeline_mode = #tpu.pipeline_mode<synchronous>, transform_indices = @transform_4, window_bounds = array<i64: 64, 16>}, {pipeline_mode = #tpu.pipeline_mode<synchronous>, transform_indices = @transform_5, window_bounds = array<i64: 1, 16>}, {pipeline_mode = #tpu.pipeline_mode<synchronous>, transform_indices = @transform_6, window_bounds = array<i64: 8, 3>}, {pipeline_mode = #tpu.pipeline_mode<synchronous>, transform_indices = @transform_7, window_bounds = array<i64: 8, 16>}, {pipeline_mode = #tpu.pipeline_mode<synchronous>, transform_indices = @transform_8, window_bounds = array<i64: 8, 32>}]} {
    %c0_i32 = arith.constant 0 : i32
    %0 = arith.cmpi eq, %arg0, %c0_i32 : i32
    %1 = arith.extui %0 : i1 to i32
    %c0_i32_0 = arith.constant 0 : i32
    %2 = arith.cmpi ne, %1, %c0_i32_0 : i32
    scf.if %2 {
      %cst_9 = arith.constant 0.000000e+00 : f32
      %17 = vector.broadcast %cst_9 : f32 to vector<8x36xf32>
      %c0_10 = arith.constant 0 : index
      %c0_11 = arith.constant 0 : index
      %18 = vector.load %arg10[%c0_10, %c0_11] : memref<8x36xf32, #tpu.memory_space<vmem>>, vector<8x36xf32>
      tpu.vector_store %arg10[%c0_10, %c0_11], %17 {strides = array<i32>} : memref<8x36xf32, #tpu.memory_space<vmem>>, vector<8x36xf32>,
    } else {
    }
    %3 = tpu.iota {dimensions = array<i32: 0>} : vector<8x256xi32>
    %c0 = arith.constant 0 : index
    %c0_1 = arith.constant 0 : index
    %4 = vector.load %arg1[%c0, %c0_1] : memref<1x256xi32, #tpu.memory_space<vmem>>, vector<1x256xi32>
    %5 = vector.broadcast %4 : vector<1x256xi32> to vector<8x256xi32>
    %6 = arith.cmpi eq, %5, %3 : vector<8x256xi32>
    %7 = arith.extui %6 : vector<8x256xi1> to vector<8x256xi32>
    %8 = arith.sitofp %7 : vector<8x256xi32> to vector<8x256xf32>
    %c0_2 = arith.constant 0 : index
    %c0_3 = arith.constant 0 : index
    %9 = vector.load %arg10[%c0_2, %c0_3] : memref<8x36xf32, #tpu.memory_space<vmem>>, vector<8x36xf32>
    %c0_4 = arith.constant 0 : index
    %c0_5 = arith.constant 0 : index
    %10 = vector.load %arg2[%c0_4, %c0_5] : memref<256x36xf32, #tpu.memory_space<vmem>>, vector<256x36xf32>
    %cst = arith.constant dense<0.000000e+00> : vector<8x36xf32>
    %11 = tpu.matmul %8, %10, %cst {dimension_numbers = #tpu.dot_dimension_numbers<[1], [0], [0], [1], [0, 0, 1, 1], [], []>} : vector<8x256xf32>, vector<256x36xf32>, vector<8x36xf32> -> vector<8x36xf32>
    %12 = arith.addf %9, %11 : vector<8x36xf32>
    %c0_6 = arith.constant 0 : index
    %c0_7 = arith.constant 0 : index
    %13 = vector.load %arg10[%c0_6, %c0_7] : memref<8x36xf32, #tpu.memory_space<vmem>>, vector<8x36xf32>
    tpu.vector_store %arg10[%c0_6, %c0_7], %12 {strides = array<i32>} : memref<8x36xf32, #tpu.memory_space<vmem>>, vector<8x36xf32>,
    %c2_i32 = arith.constant 2 : i32
    %14 = arith.cmpi eq, %arg0, %c2_i32 : i32
    %15 = arith.extui %14 : i1 to i32
    %c0_i32_8 = arith.constant 0 : i32
    %16 = arith.cmpi ne, %15, %c0_i32_8 : i32
    scf.if %16 {
      %c0_9 = arith.constant 0 : index
      %c0_10 = arith.constant 0 : index
      %17 = vector.load %arg10[%c0_9, %c0_10] : memref<8x36xf32, #tpu.memory_space<vmem>>, vector<8x36xf32>
      %18 = vector.extract_strided_slice %17 {offsets = [0, 35], sizes = [8, 1], strides = [1, 1]} : vector<8x36xf32> to vector<8x1xf32>
      %cst_11 = arith.constant 1.000000e+00 : f32
      %19 = vector.broadcast %cst_11 : f32 to vector<8x1xf32>
      %20 = arith.maximumf %18, %19 : vector<8x1xf32>
      %21 = tpu.reciprocal %20 : vector<8x1xf32> -> vector<8x1xf32>
      %22 = vector.extract_strided_slice %17 {offsets = [0, 0], sizes = [8, 32], strides = [1, 1]} : vector<8x36xf32> to vector<8x32xf32>
      %23 = vector.broadcast %21 : vector<8x1xf32> to vector<8x32xf32>
      %24 = arith.mulf %22, %23 : vector<8x32xf32>
      %25 = vector.extract_strided_slice %17 {offsets = [0, 32], sizes = [8, 3], strides = [1, 1]} : vector<8x36xf32> to vector<8x3xf32>
      %26 = vector.broadcast %21 : vector<8x1xf32> to vector<8x3xf32>
      %27 = arith.mulf %25, %26 : vector<8x3xf32>
      %c0_12 = arith.constant 0 : index
      %c0_13 = arith.constant 0 : index
      %28 = vector.load %arg7[%c0_12, %c0_13] : memref<8x3xf32, #tpu.memory_space<vmem>>, vector<8x3xf32>
      tpu.vector_store %arg7[%c0_12, %c0_13], %27 {strides = array<i32>} : memref<8x3xf32, #tpu.memory_space<vmem>>, vector<8x3xf32>,
      %c0_14 = arith.constant 0 : index
      %c0_15 = arith.constant 0 : index
      %29 = vector.load %arg9[%c0_14, %c0_15] : memref<8x32xf32, #tpu.memory_space<vmem>>, vector<8x32xf32>
      tpu.vector_store %arg9[%c0_14, %c0_15], %24 {strides = array<i32>} : memref<8x32xf32, #tpu.memory_space<vmem>>, vector<8x32xf32>,
      %c0_16 = arith.constant 0 : index
      %c0_17 = arith.constant 0 : index
      %30 = vector.load %arg3[%c0_16, %c0_17] : memref<32x64xf32, #tpu.memory_space<vmem>>, vector<32x64xf32>
      %cst_18 = arith.constant dense<0.000000e+00> : vector<8x64xf32>
      %31 = tpu.matmul %24, %30, %cst_18 {dimension_numbers = #tpu.dot_dimension_numbers<[1], [0], [0], [1], [0, 0, 1, 1], [], []>} : vector<8x32xf32>, vector<32x64xf32>, vector<8x64xf32> -> vector<8x64xf32>
      %cst_19 = arith.constant 0.000000e+00 : f32
      %32 = vector.broadcast %cst_19 : f32 to vector<8x64xf32>
      %33 = arith.maximumf %31, %32 : vector<8x64xf32>
      %c0_20 = arith.constant 0 : index
      %c0_21 = arith.constant 0 : index
      %34 = vector.load %arg4[%c0_20, %c0_21] : memref<64x64xf32, #tpu.memory_space<vmem>>, vector<64x64xf32>
      %cst_22 = arith.constant dense<0.000000e+00> : vector<8x64xf32>
      %35 = tpu.matmul %33, %34, %cst_22 {dimension_numbers = #tpu.dot_dimension_numbers<[1], [0], [0], [1], [0, 0, 1, 1], [], []>} : vector<8x64xf32>, vector<64x64xf32>, vector<8x64xf32> -> vector<8x64xf32>
      %cst_23 = arith.constant 0.000000e+00 : f32
      %36 = vector.broadcast %cst_23 : f32 to vector<8x64xf32>
      %37 = arith.maximumf %35, %36 : vector<8x64xf32>
      %c0_24 = arith.constant 0 : index
      %c0_25 = arith.constant 0 : index
      %38 = vector.load %arg5[%c0_24, %c0_25] : memref<64x16xf32, #tpu.memory_space<vmem>>, vector<64x16xf32>
      %cst_26 = arith.constant dense<0.000000e+00> : vector<8x16xf32>
      %39 = tpu.matmul %37, %38, %cst_26 {dimension_numbers = #tpu.dot_dimension_numbers<[1], [0], [0], [1], [0, 0, 1, 1], [], []>} : vector<8x64xf32>, vector<64x16xf32>, vector<8x16xf32> -> vector<8x16xf32>
      %c0_27 = arith.constant 0 : index
      %c0_28 = arith.constant 0 : index
      %40 = vector.load %arg6[%c0_27, %c0_28] : memref<1x16xf32, #tpu.memory_space<vmem>>, vector<1x16xf32>
      %41 = vector.broadcast %40 : vector<1x16xf32> to vector<8x16xf32>
      %42 = arith.addf %39, %41 : vector<8x16xf32>
      %c0_29 = arith.constant 0 : index
      %c0_30 = arith.constant 0 : index
      %43 = vector.load %arg8[%c0_29, %c0_30] : memref<8x16xf32, #tpu.memory_space<vmem>>, vector<8x16xf32>
      tpu.vector_store %arg8[%c0_29, %c0_30], %42 {strides = array<i32>} : memref<8x16xf32, #tpu.memory_space<vmem>>, vector<8x16xf32>,
    } else {
    }
    return
  }
  func.func @transform_0(%arg0: i32) -> (i32, i32) {
    %c0_i32 = arith.constant 0 : i32
    %c0_i32_0 = arith.constant 0 : i32
    return %c0_i32, %arg0 : i32, i32
  }
  func.func @transform_1(%arg0: i32) -> (i32, i32) {
    %c0_i32 = arith.constant 0 : i32
    %c0_i32_0 = arith.constant 0 : i32
    return %arg0, %c0_i32 : i32, i32
  }
  func.func @transform_2(%arg0: i32) -> (i32, i32) {
    %c0_i32 = arith.constant 0 : i32
    %c0_i32_0 = arith.constant 0 : i32
    %c0_i32_1 = arith.constant 0 : i32
    return %c0_i32, %c0_i32_0 : i32, i32
  }
  func.func @transform_3(%arg0: i32) -> (i32, i32) {
    %c0_i32 = arith.constant 0 : i32
    %c0_i32_0 = arith.constant 0 : i32
    %c0_i32_1 = arith.constant 0 : i32
    return %c0_i32, %c0_i32_0 : i32, i32
  }
  func.func @transform_4(%arg0: i32) -> (i32, i32) {
    %c0_i32 = arith.constant 0 : i32
    %c0_i32_0 = arith.constant 0 : i32
    %c0_i32_1 = arith.constant 0 : i32
    return %c0_i32, %c0_i32_0 : i32, i32
  }
  func.func @transform_5(%arg0: i32) -> (i32, i32) {
    %c0_i32 = arith.constant 0 : i32
    %c0_i32_0 = arith.constant 0 : i32
    %c0_i32_1 = arith.constant 0 : i32
    return %c0_i32, %c0_i32_0 : i32, i32
  }
  func.func @transform_6(%arg0: i32) -> (i32, i32) {
    %c0_i32 = arith.constant 0 : i32
    %c0_i32_0 = arith.constant 0 : i32
    %c0_i32_1 = arith.constant 0 : i32
    return %c0_i32, %c0_i32_0 : i32, i32
  }
  func.func @transform_7(%arg0: i32) -> (i32, i32) {
    %c0_i32 = arith.constant 0 : i32
    %c0_i32_0 = arith.constant 0 : i32
    %c0_i32_1 = arith.constant 0 : i32
    return %c0_i32, %c0_i32_0 : i32, i32
  }
  func.func @transform_8(%arg0: i32) -> (i32, i32) {
    %c0_i32 = arith.constant 0 : i32
    %c0_i32_0 = arith.constant 0 : i32
    %c0_i32_1 = arith.constant 0 : i32
    return %c0_i32, %c0_i32_0 : i32, i32
  }
}

</mosaic_0001>

<bundles_post_ra>
// kernel: tpu_custom_call.1
= control target key start
LH: loop header
LB: loop body
LE: loop exit
PB: predicated region body
PF: predicated region fallthrough
CT: control target
= control target key end

     0   :  { %14 = vsyncpa [#allocation4], 0  ;;  %s945_s0 = inlined_call_operand.vmem [shape: s32[1,768], index: 0, kind: input, shape index: {}]   ;;  %s946_s1 = inlined_call_operand.vmem [shape: f32[768,36], index: 1, kind: input, shape index: {}]   ;;  %s947_s2 = inlined_call_operand.vmem [shape: f32[32,64], index: 2, kind: input, shape index: {}]   ;;  %s948_s3 = inlined_call_operand.vmem [shape: f32[64,64], index: 3, kind: input, shape index: {}]   ;;  %s949_s4 = inlined_call_operand.vmem [shape: f32[64,16], index: 4, kind: input, shape index: {}]   ;;  %s950_s5 = inlined_call_operand.vmem [shape: f32[1,16], index: 5, kind: input, shape index: {}]   ;;  %s951_s6 = inlined_call_operand.vmem [shape: f32[8,3], index: 6, kind: output, shape index: {0}]   ;;  %s952_s7 = inlined_call_operand.hbm [shape: f32[8,16], index: 7, kind: output, shape index: {1}]   ;;  %s953_s8 = inlined_call_operand.hbm [shape: f32[8,32], index: 8, kind: output, shape index: {2}]  }
   0x1   :  { %15 = vsyncpa [#allocation6], 0  ;;  %s795_s27 = smov 0  }
   0x2 LB: > { %s801_s28 = sadd.s32 4294967295, %s742_s27   ;;  %p623_p0 = scmp.ge.s32.totalorder %s742_s27, 1  ;;  %s742_s27 = sphi %s795_s27, %s21_s27  }
   0x3   : > { %p265_p1 = scmp.lt.s32.totalorder %s742_s27, 4 }
   0x5   : > { %p266_p2 = pnand %p623_p0, %p265_p1 }
   0x6   : > { %s624_s29 = sshll.u32 (!%p266_p2), %s801_s28, 1  ;;  %s625_s30 = sshll.u32 (!%p266_p2), %s801_s28, 5 }
   0x7   : > { %269 = sbr.rel (%p266_p2) target bundleno = 729 (0x2d9), region = 44  ;;  %p299_p3 = scmp.lt.s32.totalorder (!%p266_p2), %s624_s29, 5 }
   0x8   : > { %p304_p4 = scmp.lt.s32.totalorder (!%p266_p2), %s625_s30, 95  ;;  %p627_p5 = scmp.ne.s32.totalorder (!%p266_p2), %s801_s28, 0 }
   0xc   : > { %s955_s29 = smov (!%p299_p3, %s624_s29), 5  ;;  %s957_s30 = smov (!%p304_p4, %s625_s30), 95 }
   0xd   : > { %s301_s11 = scalar_lea.vmem %s945_s0, %s955_s29  ;;  %s626_s12 = sshll.u32 %s957_s30, 3 }
   0xe   : > { %s816_s15 = scalar_lea.vmem %s946_s1, %s626_s12  ;;  %312 = sbr.rel (%p627_p5) target bundleno = 21 (0x15), region = 48 }
  0x13   : > { %vm313_vm0 = vcmask 293888   ;;  %v744_v0 = vmov 0.0  }
  0x14   : > { %314 = vst.msk [vmem:[#allocation2] sm:$0xff] %vm313_vm0, %v744_v0 }
  0x15 PF: > { %v342_v1 = vld [vmem:[%s816_s15 + $0x78] sm:$0xff]  ;;  %v341_v3 = vld [vmem:[%s816_s15 + $0x70] sm:$0xff]  ;;  %v340_v5 = vld [vmem:[%s816_s15 + $0x68] sm:$0xff]  ;;  %v315_v25 = vlaneseq  ;;  %v745_v38 = vmov 1.0   ;;  %vm400_vm3 = vcmask 293888   ;;  %p632_p6 = scmp.ne.s32.totalorder %s801_s28, 2 }
  0x16   : > { %v358_v2 = vld [vmem:[%s816_s15 + $0xf8] sm:$0xff]  ;;  %359 = vmatpush.msra.mxu0 %v342_v1  ;;  %v357_v4 = vld [vmem:[%s816_s15 + $0xf0] sm:$0xff]  ;;  %v356_v6 = vld [vmem:[%s816_s15 + $0xe8] sm:$0xff]  ;;  %s747_s30 = smov (!%p632_p6), 96  }
  0x17   : > { %379 = vmatpush.msra.mxu1 %v358_v2  ;;  %v339_v7 = vld [vmem:[%s816_s15 + $0x60] sm:$0xff]  ;;  %v338_v9 = vld [vmem:[%s816_s15 + $0x58] sm:$0xff]  ;;  %v337_v11 = vld [vmem:[%s816_s15 + $0x50] sm:$0xff]  ;;  %v316_v31 = vshrl.u32 %v315_v25, 7 }
  0x18   : > { %360 = vmatpush.msra.mxu0 %v341_v3  ;;  %v355_v8 = vld [vmem:[%s816_s15 + $0xe0] sm:$0xff]  ;;  %v354_v10 = vld [vmem:[%s816_s15 + $0xd8] sm:$0xff]  ;;  %v353_v12 = vld [vmem:[%s816_s15 + $0xd0] sm:$0xff] }
  0x19   : > { %380 = vmatpush.msra.mxu1 %v357_v4  ;;  %v336_v13 = vld [vmem:[%s816_s15 + $0x48] sm:$0xff]  ;;  %v335_v15 = vld [vmem:[%s816_s15 + $0x40] sm:$0xff]  ;;  %v334_v17 = vld [vmem:[%s816_s15 + $0x38] sm:$0xff] }
  0x1a   : > { %361 = vmatpush.msra.mxu0 %v340_v5  ;;  %v352_v14 = vld [vmem:[%s816_s15 + $0xc8] sm:$0xff]  ;;  %v351_v16 = vld [vmem:[%s816_s15 + $0xc0] sm:$0xff]  ;;  %v350_v18 = vld [vmem:[%s816_s15 + $0xb8] sm:$0xff] }
  0x1b   : > { %381 = vmatpush.msra.mxu1 %v356_v6  ;;  %v333_v19 = vld [vmem:[%s816_s15 + $0x30] sm:$0xff]  ;;  %v332_v21 = vld [vmem:[%s816_s15 + $0x28] sm:$0xff]  ;;  %v331_v23 = vld [vmem:[%s816_s15 + $0x20] sm:$0xff] }
  0x1c   : > { %362 = vmatpush.msra.mxu0 %v339_v7  ;;  %v349_v20 = vld [vmem:[%s816_s15 + $0xb0] sm:$0xff]  ;;  %v348_v22 = vld [vmem:[%s816_s15 + $0xa8] sm:$0xff]  ;;  %v347_v24 = vld [vmem:[%s816_s15 + $0xa0] sm:$0xff] }
  0x1d   : > { %382 = vmatpush.msra.mxu1 %v355_v8  ;;  %v330_v26 = vld [vmem:[%s816_s15 + $0x18] sm:$0xff]  ;;  %v317_v28 = vld [vmem:[%s301_s11] sm:$0x3]  ;;  %v329_v29 = vld [vmem:[%s816_s15 + $0x10] sm:$0xff] }
  0x1e   : > { %363 = vmatpush.msra.mxu0 %v338_v9  ;;  %v346_v27 = vld [vmem:[%s816_s15 + $0x98] sm:$0xff]  ;;  %v345_v30 = vld [vmem:[%s816_s15 + $0x90] sm:$0xff]  ;;  %v318_v32 = vperm.slane %v317_v28, 0  ;;  %v319_v33 = vperm.slane %v317_v28, 1  ;;  %v328_v34 = vld [vmem:[%s816_s15 + $0x8] sm:$0xff] }
  0x1f   : > { %383 = vmatpush.msra.mxu1 %v354_v10  ;;  %v344_v35 = vld [vmem:[%s816_s15 + $0x88] sm:$0xff]  ;;  %v327_v36 = vld [vmem:[%s816_s15] sm:$0xff] }
  0x20   : > { %364 = vmatpush.msra.mxu0 %v337_v11  ;;  %v343_v37 = vld [vmem:[%s816_s15 + $0x80] sm:$0xff]  ;;  %vm320_vm1 = vcmp.eq.s32.totalorder %v318_v32, %v316_v31  ;;  %vm321_vm2 = vcmp.eq.s32.totalorder %v319_v33, %v316_v31 }
  0x21   : > { %384 = vmatpush.msra.mxu1 %v353_v12  ;;  %v326_v40 = vld [vmem:[#allocation2] sm:$0xff] }
  0x22   : > { %365 = vmatpush.msra.mxu0 %v336_v13 }
  0x23   : > { %385 = vmatpush.msra.mxu1 %v352_v14 }
  0x24   : > { %366 = vmatpush.msra.mxu0 %v335_v15 }
  0x25   : > { %386 = vmatpush.msra.mxu1 %v351_v16 }
  0x26   : > { %367 = vmatpush.msra.mxu0 %v334_v17 }
  0x27   : > { %387 = vmatpush.msra.mxu1 %v350_v18 }
  0x28   : > { %368 = vmatpush.msra.mxu0 %v333_v19 }
  0x29   : > { %388 = vmatpush.msra.mxu1 %v349_v20 }
  0x2a   : > { %369 = vmatpush.msra.mxu0 %v332_v21 }
  0x2b   : > { %389 = vmatpush.msra.mxu1 %v348_v22 }
  0x2c   : > { %370 = vmatpush.msra.mxu0 %v331_v23 }
  0x2d   : > { %390 = vmatpush.msra.mxu1 %v347_v24 }
  0x2e   : > { %371 = vmatpush.msra.mxu0 %v330_v26 }
  0x2f   : > { %391 = vmatpush.msra.mxu1 %v346_v27 }
  0x30   : > { %372 = vmatpush.msra.mxu0 %v329_v29 }
  0x31   : > { %392 = vmatpush.msra.mxu1 %v345_v30 }
  0x32   : > { %373 = vmatpush.msra.mxu0 %v328_v34 }
  0x33   : > { %393 = vmatpush.msra.mxu1 %v344_v35 }
  0x34   : > { %374 = vmatpush.msra.mxu0 %v327_v36 }
  0x35   : > { %394 = vmatpush.msra.mxu1 %v343_v37  ;;  %630 = vmatmul.msk.f32.vlgmr.msra.gmra.mxu0 %vm320_vm1, %v745_v38 }
  0x36   : > { %631 = vmatmul.msk.f32.vlgmr.msra.gmra.mxu1 %vm321_vm2, %v745_v38 }
  0xb2   : > { %v376_v39 = vpop.f32.mrf.mxu0 }
  0xb3   : > { %v396_v41 = vpop.f32.mrf.mxu1 }
  0xb4   : > { %v397_v42 = vadd.f32 %v396_v41, %v376_v39  ;;  %405 = sbr.rel (%p632_p6) target bundleno = 719 (0x2cf), region = 52 }
  0xb6   : > { %v399_v43 = vadd.f32 %v397_v42, %v326_v40 }
  0xb8   : > { %401 = vst.msk [vmem:[#allocation2] sm:$0xff] %vm400_vm3, %v399_v43 }
  0xb9   : > { %v439_v45 = vld [vmem:[%s947_s2 + $0x18] sm:$0xff]  ;;  %v438_v46 = vld [vmem:[%s947_s2 + $0x10] sm:$0xff]  ;;  %v746_v47 = vmov 35   ;;  %v437_v49 = vld [vmem:[%s947_s2 + $0x8] sm:$0xff]  ;;  %vm434_vm8 = vcmask 261120   ;;  %vm432_vm9 = vcmask 23552  }
  0xba   : > { %668 = vset.pattern.permute.xlu0 %v746_v47  ;;  %454 = vmatpush.msra.mxu0 %v439_v45  ;;  %v436_v60 = vld [vmem:[%s947_s2] sm:$0xff]  ;;  %v470_v61 = vld [vmem:[%s948_s3 + $0x38] sm:$0xff]  ;;  %v469_v0 = vld [vmem:[%s948_s3 + $0x30] sm:$0xff]  ;;  %vm471_vm10 = vcmask 523264   ;;  %vm531_vm11 = vcmask 130048  }
  0xbb   : > { %483 = vmatpush.msra.mxu1 %v470_v61  ;;  %v468_v1 = vld [vmem:[%s948_s3 + $0x28] sm:$0xff]  ;;  %v467_v2 = vld [vmem:[%s948_s3 + $0x20] sm:$0xff]  ;;  %v466_v3 = vld [vmem:[%s948_s3 + $0x18] sm:$0xff] }
  0xbc   : > { %455 = vmatpush.msra.mxu0 %v438_v46  ;;  %v465_v4 = vld [vmem:[%s948_s3 + $0x10] sm:$0xff]  ;;  %v464_v5 = vld [vmem:[%s948_s3 + $0x8] sm:$0xff]  ;;  %v463_v6 = vld [vmem:[%s948_s3] sm:$0xff] }
  0xbd   : > { %484 = vmatpush.msra.mxu1 %v469_v0  ;;  %v503_v7 = vld [vmem:[%s949_s4 + $0x38] sm:$0xff]  ;;  %v502_v8 = vld [vmem:[%s949_s4 + $0x30] sm:$0xff]  ;;  %v501_v9 = vld [vmem:[%s949_s4 + $0x28] sm:$0xff] }
  0xbe   : > { %456 = vmatpush.msra.mxu0 %v437_v49  ;;  %519 = vmatpush.msra.mxu2 %v503_v7  ;;  %v500_v10 = vld [vmem:[%s949_s4 + $0x20] sm:$0xff]  ;;  %v499_v11 = vld [vmem:[%s949_s4 + $0x18] sm:$0xff]  ;;  %v498_v12 = vld [vmem:[%s949_s4 + $0x10] sm:$0xff] }
  0xbf   : > { %v406_v44 = vld [vmem:[#allocation2] sm:$0xff]  ;;  %485 = vmatpush.msra.mxu1 %v468_v1  ;;  %v497_v16 = vld [vmem:[%s949_s4 + $0x8] sm:$0xff] }
  0xc0   : > { %v407_v48 = vmax.f32 %v406_v44, 1.0  ;;  %457 = vmatpush.msra.mxu0 %v436_v60  ;;  %520 = vmatpush.msra.mxu2 %v502_v8  ;;  %v496_v17 = vld [vmem:[%s949_s4] sm:$0xff] }
  0xc1   : > { %486 = vmatpush.msra.mxu1 %v467_v2  ;;  %v669_v20 = vld [vmem:[%s950_s5] ss:$0 sm:$0xff] }
  0xc2   : > { %670 = vrcp.f32 %v407_v48  ;;  %v419_v52 = vand.u32 2147483648, %v407_v48  ;;  %vm413_vm4 = vweird.f32 %v407_v48  ;;  %v417_v54 = vand.u32 2147483647, %v407_v48  ;;  %521 = vmatpush.msra.mxu2 %v501_v9 }
  0xc3   : > { %487 = vmatpush.msra.mxu1 %v466_v3 }
  0xc4   : > { %v420_v56 = vor.u32 1.1754944e-38, %v419_v52  ;;  %vm418_vm7 = vcmp.eq.f32.partialorder %v417_v54, 8.507059e+37  ;;  %522 = vmatpush.msra.mxu2 %v500_v10 }
  0xc5   : > { %488 = vmatpush.msra.mxu1 %v465_v4 }
  0xc6   : > { %523 = vmatpush.msra.mxu2 %v499_v11 }
  0xc7   : > { %489 = vmatpush.msra.mxu1 %v464_v5 }
  0xc8   : > { %v671_v50 = vpop.eup %670  ;;  %524 = vmatpush.msra.mxu2 %v498_v12 }
  0xc9   : > { %v409_v51 = vmul.f32 %v671_v50, %v407_v48  ;;  %vm414_vm5 = vweird.f32 %v671_v50  ;;  %490 = vmatpush.msra.mxu1 %v463_v6 }
  0xca   : > { %vm415_vm6 = vmor %vm413_vm4, %vm414_vm5  ;;  %525 = vmatpush.msra.mxu2 %v497_v16 }
  0xcb   : > { %v410_v53 = vsub.f32 1.0, %v409_v51 }
  0xcc   : > { %526 = vmatpush.msra.mxu2 %v496_v17 }
  0xcd   : > { %v411_v55 = vmul.f32 %v671_v50, %v410_v53 }
  0xcf   : > { %v412_v57 = vadd.f32 %v671_v50, %v411_v55 }
  0xd1   : > { %v416_v58 = vsel %vm415_vm6, %v671_v50, %v412_v57 }
  0xd2   : > { %v421_v59 = vsel %vm418_vm7, %v420_v56, %v416_v58 }
  0xd3   : > { %424 = vperm.xlu0 %668, %v421_v59  }
 0x145   : > { %v425_v62 = vpop.permute.xlu0 %424 }
 0x146   : > { %v427_v63 = vmul.f32 %v425_v62, %v406_v44 }
 0x148   : > { %429 = vrot.lane.b32.xlu0 %v427_v63, %s747_s30  ;;  %435 = vst.msk [vmem:[#allocation5] sm:$0xff] %vm434_vm8, %v427_v63  ;;  %633 = vmatmul.msk.f32.vlgmr.msra.gmra.mxu0 %vm434_vm8, %v427_v63 }
 0x1ba   : > { %v430_v13 = vpop.permute.xlu0 %429 }
 0x1bb   : > { %433 = vst.msk [vmem:[%s951_s6] sm:$0xff] %vm432_vm9, %v430_v13 }
 0x1c5   : > { %v459_v14 = vpop.f32.mrf.mxu0 }
 0x1c6   : > { %v462_v15 = vmax.f32 %v459_v14, 0.0 }
 0x1c8   : > { %634 = vmatmul.msk.f32.vlgmr.msra.gmra.mxu1 %vm471_vm10, %v462_v15 }
 0x245   : > { %v492_v18 = vpop.f32.mrf.mxu1 }
 0x246   : > { %v495_v19 = vmax.f32 %v492_v18, 0.0 }
 0x248   : > { %635 = vmatmul.msk.f32.vlgmr.msra.gmra.mxu2 %vm471_vm10, %v495_v19 }
 0x2cb   : > { %v528_v21 = vpop.f32.mrf.mxu2 }
 0x2cc   : > { %v529_v22 = vadd.f32 %v669_v20, %v528_v21 }
 0x2ce   : > { %532 = vst.msk [vmem:[#allocation3] sm:$0xff] %vm531_vm11, %v529_v22 }
 0x2cf PF: > { %p650_p7 = scmp.eq.s32.totalorder %s801_s28, 2  ;;  %s748_s23 = smov [#allocation3]  }
 0x2d0   : > { %s542_s24 = sshll.u32 %s748_s23, 4  ;;  %s544_s29 = sshll.u32 %s952_s7, 4  ;;  %s543_s24 = int_to_ptr.vmem [resolvable:$true] %s542_s24  ;;  %s545_s29 = int_to_ptr.hbm [resolvable:$true] %s544_s29 }
 0x2d1   : > { %643 = dma.vmem_to_hbm [thread:$0]  (%p650_p7), %s543_s24, 128, %s545_s29, [#allocation4]  }
 0x2d2   : > { %s556_s10 = sshll.u32 %s953_s8, 4  ;;  %s749_s11 = smov [#allocation5]   ;;  %s557_s10 = int_to_ptr.hbm [resolvable:$true] %s556_s10 }
 0x2d3   : > { %s554_s12 = sshll.u32 %s749_s11, 4  ;;  %s555_s12 = int_to_ptr.vmem [resolvable:$true] %s554_s12 }
 0x2d4   : > { %645 = dma.vmem_to_hbm [thread:$0]  (%p650_p7), %s555_s12, 128, %s557_s10, [#allocation6]  }
 0x2d5   : > { %733 = dma.done.wait (%p650_p7), [#allocation4], 128  }
 0x2d6   : > { %735 = vsyncadd (%p650_p7), [#allocation4], 4294967168 }
 0x2d7   : > { %737 = dma.done.wait (%p650_p7), [#allocation6], 128  }
 0x2d8   : > { %739 = vsyncadd (%p650_p7), [#allocation6], 4294967168 }
 0x2d9 PF: > { %s21_s27 = sadd.s32 1, %s742_s27  }
 0x2da   : > { %p18_p8 = scmp.ge.s32.totalorder %s21_s27, 5  }
 0x2dc   :  { %20 = sbr.rel (!%p18_p8) target bundleno = 2 (0x2), region = 98 }
 0x2e1   :  { %578 = vsyncpa [#allocation4], 1 }
 0x2e2   :  { %580 = vsyncpa [#allocation4 + $0x1], 1 }
 0x2e3   :  { %581 = vsyncpa [#allocation6], 1 }

</bundles_post_ra>
